<compile_context>
chip_gen: v7x
topology: tpu7x:2x2x1
jax: 0.10.0
libtpu: 0.0.40
codegen_flags: <defaults>
</compile_context>

<pallas_src>
import jax
import jax.numpy as jnp
from jax.experimental import pallas as pl
from jax.experimental.pallas import tpu as pltpu


def _scale_kernel(w_ref, x_ref, o_ref):
    # w_ref: (rb, 1) per-row scale column; x_ref / o_ref: (rb, cb) tile.
    # Single broadcast VPU multiply over a lane-dense tile (pure HBM roofline).
    o_ref[...] = x_ref[...] * w_ref[...]


def _tile_bytes_target():
    """Per-generation per-tile byte budget (double buffering => ~4x in VMEM)."""
    try:
        kind = jax.devices()[0].device_kind.lower()
    except Exception:
        kind = ""
    if "v6" in kind or "v7" in kind:
        # v6e/v7x: 4 MiB tiles -> ~16 MiB double-buffered, inside the 32 MiB
        # default scoped-VMEM limit; amortizes step overhead against fast HBM.
        return 4 << 20
    # v5e (and older / unknown): stay at 2 MiB so ~8 MiB footprint fits the
    # 16 MiB default scoped-VMEM limit with headroom.
    return 2 << 20


def _select_blocks(rows, cols, itemsize, tile_bytes):
    """Pick (rb, cb) for a (rows, cols) elementwise tile."""
    sub_align = max(8, 32 // itemsize)   # 8 f32, 16 bf16, 32 int8/fp8
    lane_align = 128

    # ---- column (lane) block: prefer full extent ----
    if cols * sub_align * itemsize <= tile_bytes:
        cb = cols  # full extent: contiguous DMA, unmasked stores, no 128 rule
    else:
        max_cb = max(lane_align,
                     (tile_bytes // (sub_align * itemsize)) // lane_align * lane_align)
        cb = 0
        cand = min(max_cb, (cols // lane_align) * lane_align)
        # Prefer a 128-aligned block that divides cols evenly (no ragged tail).
        while cand >= lane_align:
            if cols % cand == 0:
                cb = cand
                break
            cand -= lane_align
        if cb == 0:
            cb = min(max_cb, max(lane_align, (cols // lane_align) * lane_align))

    # ---- row (sublane) block from the remaining byte budget ----
    rb = (tile_bytes // (cb * itemsize)) // sub_align * sub_align
    rb = max(sub_align, rb)
    rb = min(rows, rb)
    if rb < rows:
        rb = (rb // sub_align) * sub_align  # keep aligned unless full extent

    # v7x: a would-be single-block grid leaves one TensorCore idle -> split the
    # row axis in two (harmless single extra step on 1-TC chips).
    if rb >= rows and cb >= cols and rows >= 2 * sub_align:
        half = -(-rows // 2)                        # ceil(rows / 2)
        rb = min(rows, -(-half // sub_align) * sub_align)

    return rb, cb


def scale_module_forward(x, weight, *, donate_x=False):
    """Pallas equivalent of _ScaleModule.forward: weight * x.

    x:      (N, C, H, W) array (NCHW, matching the PyTorch conv layout)
    weight: (1, C, 1, 1) array  (the module's nn.Parameter, dims=[1, C, 1, 1])
    donate_x: alias the output onto x's buffer (only if caller won't reuse x).
    """
    N, C, H, W = x.shape
    assert weight.shape == (1, C, 1, 1), "kernel implements the per-channel case"

    rows, cols = N * C, H * W

    # Lane-dense 2-D view (free reshape on a contiguous NCHW tensor).
    x2 = x.reshape(rows, cols)

    # Per-row scale column: channel scale repeated for every batch element.
    # TODO(synk): casting the f32 parameter to x.dtype rounds slightly earlier
    # than PyTorch's f32-parameter multiply when x is bf16 (negligible drift).
    w_rows = (jnp.broadcast_to(weight.reshape(1, C), (N, C))
              .reshape(rows, 1).astype(x.dtype))

    itemsize = jnp.dtype(x.dtype).itemsize
    rb, cb = _select_blocks(rows, cols, itemsize, _tile_bytes_target())
    grid = (pl.cdiv(rows, rb), pl.cdiv(cols, cb))  # cols innermost: weight
    #                                               # block index constant there
    out2 = pl.pallas_call(
        _scale_kernel,
        out_shape=jax.ShapeDtypeStruct((rows, cols), x.dtype),
        grid_spec=pltpu.PrefetchScalarGridSpec(
            num_scalar_prefetch=0,
            grid=grid,
            in_specs=[
                # Per-row scale column in VMEM (broadcast inside the kernel).
                pl.BlockSpec((rb, 1), lambda i, j: (i, 0)),
                # Large lane-dense x tile.
                pl.BlockSpec((rb, cb), lambda i, j: (i, j)),
            ],
            out_specs=pl.BlockSpec((rb, cb), lambda i, j: (i, j)),
        ),
        compiler_params=pltpu.CompilerParams(
            dimension_semantics=("parallel", "parallel"),
        ),
        input_output_aliases=({1: 0} if donate_x else {}),
    )(w_rows, x2)

    return out2.reshape(N, C, H, W)


if __name__ == "__main__":
    key = jax.random.PRNGKey(0)
    k0, k1 = jax.random.split(key)

    # --- Primary test: small NCHW f32, matching WTConv2d's dims=[1,C,1,1]. ---
    N, C, H, W = 2, 4, 16, 16
    init_scale = 0.1  # WTConv2d uses _ScaleModule([1, C, 1, 1], init_scale=0.1)
    x = jax.random.normal(k0, (N, C, H, W), dtype=jnp.float32)
    weight = jnp.ones((1, C, 1, 1), dtype=jnp.float32) * init_scale

    out = jax.block_until_ready(scale_module_forward(x, weight))
    ref = weight * x
    assert out.shape == x.shape and out.dtype == x.dtype
    assert jnp.allclose(out, ref, atol=1e-6, rtol=1e-6)

    # --- Coverage test: bf16, rows not a multiple of the row block, and
    #     H*W not a multiple of 128 (partial-tile masking + bf16 sublane
    #     alignment + forced 2-way row split path). ---
    N2, C2, H2, W2 = 5, 7, 28, 28
    x_b = jax.random.normal(k1, (N2, C2, H2, W2), dtype=jnp.float32).astype(jnp.bfloat16)
    w_b = jnp.ones((1, C2, 1, 1), dtype=jnp.float32) * init_scale

    out_b = jax.block_until_ready(scale_module_forward(x_b, w_b))
    ref_b = w_b.astype(jnp.bfloat16) * x_b  # same early-cast semantics as kernel
    assert out_b.shape == x_b.shape and out_b.dtype == x_b.dtype
    assert jnp.allclose(out_b.astype(jnp.float32), ref_b.astype(jnp.float32),
                        atol=1e-6, rtol=1e-6)

    print("KERNEL_OK")
</pallas_src>

<mosaic_0001>
module attributes {stable_mosaic.version = 11 : i64} {
  func.func @_scale_kernel(%arg0: i32, %arg1: i32, %arg2: memref<8x1xf32, #tpu.memory_space<vmem>>, %arg3: memref<8x256xf32, #tpu.memory_space<vmem>>, %arg4: memref<8x256xf32, #tpu.memory_space<vmem>>) attributes {dimension_semantics = [#tpu.dimension_semantics<parallel>, #tpu.dimension_semantics<parallel>], iteration_bounds = array<i64: 1, 1>, scalar_prefetch = 0 : i64, scratch_operands = 0 : i64, tpu.core_type = #tpu.core_type<tc>, window_params = [{transform_indices = @transform_0, window_bounds = array<i64: 8, 1>}, {transform_indices = @transform_1, window_bounds = array<i64: 8, 256>}, {transform_indices = @transform_2, window_bounds = array<i64: 8, 256>}]} {
    %c0 = arith.constant 0 : index
    %c0_0 = arith.constant 0 : index
    %0 = vector.load %arg3[%c0, %c0_0] : memref<8x256xf32, #tpu.memory_space<vmem>>, vector<8x256xf32>
    %c0_1 = arith.constant 0 : index
    %c0_2 = arith.constant 0 : index
    %1 = vector.load %arg2[%c0_1, %c0_2] : memref<8x1xf32, #tpu.memory_space<vmem>>, vector<8x1xf32>
    %2 = vector.broadcast %1 : vector<8x1xf32> to vector<8x256xf32>
    %3 = arith.mulf %0, %2 : vector<8x256xf32>
    %c0_3 = arith.constant 0 : index
    %c0_4 = arith.constant 0 : index
    %4 = vector.load %arg4[%c0_3, %c0_4] : memref<8x256xf32, #tpu.memory_space<vmem>>, vector<8x256xf32>
    tpu.vector_store %arg4[%c0_3, %c0_4], %3 {strides = array<i32>} : memref<8x256xf32, #tpu.memory_space<vmem>>, vector<8x256xf32>,
    return
  }
  func.func @transform_0(%arg0: i32, %arg1: i32) -> (i32, i32) {
    %c0_i32 = arith.constant 0 : i32
    %c0_i32_0 = arith.constant 0 : i32
    return %arg0, %c0_i32 : i32, i32
  }
  func.func @transform_1(%arg0: i32, %arg1: i32) -> (i32, i32) {
    %c0_i32 = arith.constant 0 : i32
    return %arg0, %arg1 : i32, i32
  }
  func.func @transform_2(%arg0: i32, %arg1: i32) -> (i32, i32) {
    %c0_i32 = arith.constant 0 : i32
    return %arg0, %arg1 : i32, i32
  }
}

</mosaic_0001>

<bundles_post_ra>
// kernel: tpu_custom_call.1
= control target key start
LH: loop header
LB: loop body
LE: loop exit
PB: predicated region body
PF: predicated region fallthrough
CT: control target
= control target key end

     0   :  { %7 = vsyncpa [#allocation3], 0  ;;  %s148_s0 = inlined_call_operand.vmem [shape: f32[8,1], index: 0, kind: input, shape index: {}]   ;;  %s149_s1 = inlined_call_operand.hbm [shape: f32[8,256], index: 1, kind: input, shape index: {}]   ;;  %s150_s2 = inlined_call_operand.hbm [shape: f32[8,256], index: 2, kind: output, shape index: {}]  }
   0x1   :  { %8 = vsyncpa [#allocation4], 0  ;;  %s103_s9 = smov [#allocation2]   ;;  %s55_s13 = scalar_lea.hbm %s149_s1, 256 }
   0x2   :  { %s17_s10 = sshll.u32 %s103_s9, 4  ;;  %p56_p0 = scmp.ne.s32.totalorder %s149_s1, %s55_s13  ;;  %s18_s10 = int_to_ptr.vmem [resolvable:$true] %s17_s10 }
   0x3   :  { %p59_p1 = scmp.lt.u32.totalorder %s55_s13, %s149_s1 }
   0x5   :  { %p61_p2 = pnand %p59_p1, %p56_p0 }
   0x7   :  { %64 = shalt.err (!%p61_p2)
}
   0x8   :  { %s65_s18 = scalar_lea.vmem %s18_s10, 256  ;;  %p70_p4 = scmp.lt.s32.totalorder %s18_s10, %s18_s10 }
   0x9   :  { %p66_p3 = scmp.ne.s32.totalorder %s18_s10, %s65_s18  ;;  %p71_p5 = scmp.lt.s32.totalorder %s65_s18, %s65_s18 }
   0xb   :  { %p72_p6 = por %p71_p5, %p70_p4 }
   0xd   :  { %p73_p7 = pnand %p72_p6, %p66_p3 }
   0xf   :  { %76 = shalt.err (!%p73_p7)
}
  0x10   :  { %20 = dma.hbm_to_vmem [thread:$0]  %s149_s1, 256, %s18_s10, [#allocation3]  }
  0x11   :  { %99 = dma.done.wait [#allocation3], 256  }
  0x12   :  { %100 = vsyncadd [#allocation3], 4294967040  ;;  %v104_v0 = vmov 0   ;;  %v26_v1 = vld [vmem:[%s148_s0] sm:$0xff]  ;;  %v25_v3 = vld [vmem:[#allocation2 + $0x8] sm:$0xff]  ;;  %s105_s23 = smov [#allocation5]  }
  0x13   :  { %54 = vset.pattern.permute.xlu0 %v104_v0  ;;  %v24_v2 = vld [vmem:[#allocation2] sm:$0xff]  ;;  %s42_s24 = sshll.u32 %s105_s23, 4  ;;  %s43_s24 = int_to_ptr.vmem [resolvable:$true] %s42_s24 }
  0x14   :  { %29 = vperm.xlu0 %54, %v26_v1   ;;  %s77_s1 = scalar_lea.vmem %s43_s24, 256  ;;  %p82_p9 = scmp.lt.s32.totalorder %s43_s24, %s43_s24 }
  0x15   :  { %p78_p8 = scmp.ne.s32.totalorder %s43_s24, %s77_s1  ;;  %p83_p10 = scmp.lt.s32.totalorder %s77_s1, %s77_s1 }
  0x17   :  { %p84_p11 = por %p83_p10, %p82_p9 }
  0x19   :  { %p85_p12 = pnand %p84_p11, %p78_p8 }
  0x93   :  { %v30_v4 = vpop.permute.xlu0 %29 }
  0x94   :  { %v32_v5 = vmul.f32 %v30_v4, %v24_v2  ;;  %v33_v6 = vmul.f32 %v30_v4, %v25_v3 }
  0x96   :  { %34 = vst [vmem:[#allocation5] sm:$0xff] %v32_v5  ;;  %35 = vst [vmem:[#allocation5 + $0x8] sm:$0xff] %v33_v6 }
  0x97   :  { %88 = shalt.err (!%p85_p12)
}
  0x98   :  { %s89_s26 = scalar_lea.hbm %s150_s2, 256 }
  0x99   :  { %p90_p13 = scmp.ne.s32.totalorder %s150_s2, %s89_s26  ;;  %p93_p0 = scmp.lt.u32.totalorder %s89_s26, %s150_s2 }
  0x9b   :  { %p95_p1 = pnand %p93_p0, %p90_p13 }
  0x9d   :  { %98 = shalt.err (!%p95_p1)
}
  0x9e   :  { %45 = dma.vmem_to_hbm [thread:$0]  %s43_s24, 256, %s150_s2, [#allocation4]  }
  0x9f   :  { %101 = dma.done.wait [#allocation4], 256  }
  0xa0   :  { %102 = vsyncadd [#allocation4], 4294967040 }
  0xa1   :  { %49 = vsyncpa [#allocation3], 1 }
  0xa2   :  { %50 = vsyncpa [#allocation4], 1 }

</bundles_post_ra>
